<compile_context>
chip_gen: v7x
topology: tpu7x:2x2x1
jax: 0.10.0
libtpu: 0.0.40
codegen_flags: <defaults>
</compile_context>

<pallas_src>
import jax
import jax.numpy as jnp
from jax.experimental import pallas as pl
from jax.experimental.pallas import tpu as pltpu


def gtconv_kernel(w_ref, a_ref, o_ref):
    # w_ref: (C_out, C_in)          raw weights, VMEM-resident across the grid
    # a_ref: (C_in, S_TILE, 128)    current spatial tile of A (fully packed vregs)
    # o_ref: (C_out, S_TILE, 128)   current spatial tile of the output
    w = w_ref[...]
    # softmax over dim=1 (C_in), matching F.softmax(self.weight, dim=1).
    # Tiny (C_out x C_in) work, recomputed per step; hides under the tile DMA.
    w_max = jnp.max(w, axis=1, keepdims=True)
    w_exp = jnp.exp(w - w_max)
    w_soft = w_exp / jnp.sum(w_exp, axis=1, keepdims=True)   # (C_out, C_in)

    a = a_ref[...]                                            # (C_in, S_TILE, 128)
    c_out, c_in = w_ref.shape
    # K = C_in is tiny -> per-channel VPU scale-add (broadcast (1,1) weight
    # against the (S_TILE, 128) slab).  Kernel is HBM-bound; this all hides
    # under the DMA, so no MXU shape / softmax hoisting games.
    for o in range(c_out):
        acc = w_soft[o:o + 1, 0:1] * a[0]
        for c in range(1, c_in):
            acc = acc + w_soft[o:o + 1, c:c + 1] * a[c]
        o_ref[o] = acc.astype(o_ref.dtype)


def _round_up(x, m):
    return ((x + m - 1) // m) * m


def _vmem_budget_bytes():
    """Per-generation VMEM sizing.

    Returns (tile_budget, vmem_limit): the double-buffered streamed-block
    footprint is capped at ~65% of per-core VMEM and the Mosaic limit is set
    at ~75%, leaving headroom for the resident weight block and internal
    scratch.  v7x: ~41.6 / 48 MiB;  v5e/v6e: ~83 / 96 MiB.
    """
    cap = 64 << 20  # conservative fallback: v7x per-TC VMEM, safe everywhere
    try:
        cap = int(pltpu.get_tpu_info().vmem_capacity_bytes)
    except Exception:
        pass
    cap = max(32 << 20, min(cap, 128 << 20))
    tile_budget = int(cap * 0.65)
    vmem_limit = min(int(cap * 0.75), 112 << 20)
    return tile_budget, vmem_limit


def _pick_s_tile(c_in, c_out, s_total, dtype_bytes, tile_budget_bytes, min_steps=8):
    """Largest sublane tile (multiple of 8) whose *double-buffered* footprint
    fits the budget.  3-D (C, S_TILE, 128) blocks have no sublane padding, so
    the true cost per sublane row is exactly (C_in + C_out) * 128 * bytes * 2."""
    bytes_per_s_row = (c_in + c_out) * 128 * dtype_bytes * 2
    max_tile = tile_budget_bytes // bytes_per_s_row
    max_tile = max(8, (max_tile // 8) * 8)
    # Megacore balance (v7x): when the problem is large enough, aim for at
    # least `min_steps` grid steps; extra steps only cost ~0.35us each.
    if s_total >= min_steps * 8:
        balanced = _round_up(pl.cdiv(s_total, min_steps), 8)
        max_tile = min(max_tile, balanced)
    return min(max_tile, s_total)


def gtconv_forward(A, weight, *, min_pallas_lanes=64 * 1024):
    """A: (C_in, N, N); weight: (C_out, C_in, 1, 1) -> (C_out, N, N) float32."""
    c_in, n1, n2 = A.shape
    c_out = weight.shape[0]
    w2d = weight.reshape(c_out, c_in).astype(jnp.float32)
    nn = n1 * n2

    if nn < min_pallas_lanes:
        # Small-problem fast path: launch + pipeline prologue dominate; a plain
        # einsum is faster.  Pass min_pallas_lanes=0 to force the Pallas path.
        w_soft = jax.nn.softmax(w2d, axis=1)
        return jnp.einsum("oc,cij->oij", w_soft, A.astype(jnp.float32))

    # Lane-dense 3-D layout: pad NN once to a multiple of 128*8 so the
    # (S, 128) trailing dims tile perfectly (S is a multiple of 8).
    nn_pad = _round_up(nn, 128 * 8)
    a_flat = A.reshape(c_in, nn).astype(jnp.float32)
    if nn_pad != nn:
        a_flat = jnp.pad(a_flat, ((0, 0), (0, nn_pad - nn)))
    s_total = nn_pad // 128
    a3 = a_flat.reshape(c_in, s_total, 128)

    dtype_bytes = 4
    tile_budget, vmem_limit = _vmem_budget_bytes()
    s_tile = _pick_s_tile(c_in, c_out, s_total, dtype_bytes, tile_budget)
    grid = (pl.cdiv(s_total, s_tile),)

    cost = pl.CostEstimate(
        flops=2 * c_out * c_in * nn_pad,
        transcendentals=c_out * c_in * grid[0],
        bytes_accessed=(c_in + c_out) * nn_pad * dtype_bytes + c_out * c_in * 4,
    )

    out3 = pl.pallas_call(
        gtconv_kernel,
        out_shape=jax.ShapeDtypeStruct((c_out, s_total, 128), jnp.float32),
        grid=grid,
        in_specs=[
            # weight: constant block index -> stays resident in VMEM
            pl.BlockSpec((c_out, c_in), lambda i: (0, 0)),
            # A: streamed along the padded spatial axis, fully packed vregs
            pl.BlockSpec((c_in, s_tile, 128), lambda i: (0, i, 0)),
        ],
        out_specs=pl.BlockSpec((c_out, s_tile, 128), lambda i: (0, i, 0)),
        compiler_params=pltpu.CompilerParams(
            dimension_semantics=("parallel",),   # v7x: 2 TCs split the stream
            vmem_limit_bytes=vmem_limit,
        ),
        cost_estimate=cost,
    )(w2d, a3)

    out = out3.reshape(c_out, nn_pad)[:, :nn].reshape(c_out, n1, n2)
    return out


if __name__ == "__main__":
    key = jax.random.PRNGKey(0)
    k_w, k_a = jax.random.split(key)

    in_channels = 4
    out_channels = 2
    N = 16

    # nn.init.normal_(self.weight): standard normal, deterministic via PRNGKey(0)
    weight = jax.random.normal(k_w, (out_channels, in_channels, 1, 1), dtype=jnp.float32)
    # input adjacency stack A: (C_in, N, N)
    A = jax.random.normal(k_a, (in_channels, N, N), dtype=jnp.float32)

    # Force the Pallas path for this tiny smoke test (production callers would
    # leave the default threshold and let small problems take the einsum path).
    out = gtconv_forward(A, weight, min_pallas_lanes=0)
    jax.block_until_ready(out)

    # reference check in plain JAX
    w_soft = jax.nn.softmax(weight, axis=1)                # (C_out, C_in, 1, 1)
    ref = jnp.sum(A[None, :, :, :] * w_soft, axis=1)       # (C_out, N, N)
    assert out.shape == (out_channels, N, N)
    assert jnp.allclose(out, ref, atol=1e-5, rtol=1e-5), "mismatch vs reference"

    print("KERNEL_OK")
</pallas_src>

<mosaic_0001>
module attributes {stable_mosaic.version = 11 : i64} {
  func.func @gtconv_kernel(%arg0: i32, %arg1: memref<2x4xf32, #tpu.memory_space<vmem>>, %arg2: memref<4x8x128xf32, #tpu.memory_space<vmem>>, %arg3: memref<2x8x128xf32, #tpu.memory_space<vmem>>) attributes {dimension_semantics = [#tpu.dimension_semantics<parallel>], iteration_bounds = array<i64: 1>, scalar_prefetch = 0 : i64, scratch_operands = 0 : i64, tpu.core_type = #tpu.core_type<tc>, window_params = [{pipeline_mode = #tpu.pipeline_mode<synchronous>, transform_indices = @transform_0, window_bounds = array<i64: 2, 4>}, {transform_indices = @transform_1, window_bounds = array<i64: 4, 8, 128>}, {transform_indices = @transform_2, window_bounds = array<i64: 2, 8, 128>}]} {
    %c0 = arith.constant 0 : index
    %c0_0 = arith.constant 0 : index
    %0 = vector.load %arg1[%c0, %c0_0] : memref<2x4xf32, #tpu.memory_space<vmem>>, vector<2x4xf32>
    %cst = arith.constant dense<0xFF800000> : vector<2xf32>
    %1 = vector.multi_reduction <maximumf>, %0, %cst [1] : vector<2x4xf32> to vector<2xf32>
    %2 = vector.shape_cast %1 : vector<2xf32> to vector<2x1xf32>
    %3 = vector.broadcast %2 : vector<2x1xf32> to vector<2x4xf32>
    %4 = arith.subf %0, %3 : vector<2x4xf32>
    %5 = math.exp %4 : vector<2x4xf32>
    %cst_1 = arith.constant dense<0.000000e+00> : vector<2xf32>
    %6 = vector.multi_reduction <add>, %5, %cst_1 [1] : vector<2x4xf32> to vector<2xf32>
    %7 = vector.shape_cast %6 : vector<2xf32> to vector<2x1xf32>
    %8 = vector.broadcast %7 : vector<2x1xf32> to vector<2x4xf32>
    %9 = arith.divf %5, %8 : vector<2x4xf32>
    %c0_2 = arith.constant 0 : index
    %c0_3 = arith.constant 0 : index
    %c0_4 = arith.constant 0 : index
    %10 = vector.load %arg2[%c0_2, %c0_3, %c0_4] : memref<4x8x128xf32, #tpu.memory_space<vmem>>, vector<4x8x128xf32>
    %11 = vector.extract_strided_slice %9 {offsets = [0, 0], sizes = [1, 1], strides = [1, 1]} : vector<2x4xf32> to vector<1x1xf32>
    %12 = vector.extract_strided_slice %10 {offsets = [0, 0, 0], sizes = [1, 8, 128], strides = [1, 1, 1]} : vector<4x8x128xf32> to vector<1x8x128xf32>
    %13 = vector.shape_cast %12 : vector<1x8x128xf32> to vector<8x128xf32>
    %14 = vector.broadcast %11 : vector<1x1xf32> to vector<8x128xf32>
    %15 = arith.mulf %14, %13 : vector<8x128xf32>
    %16 = vector.extract_strided_slice %9 {offsets = [0, 1], sizes = [1, 1], strides = [1, 1]} : vector<2x4xf32> to vector<1x1xf32>
    %17 = vector.extract_strided_slice %10 {offsets = [1, 0, 0], sizes = [1, 8, 128], strides = [1, 1, 1]} : vector<4x8x128xf32> to vector<1x8x128xf32>
    %18 = vector.shape_cast %17 : vector<1x8x128xf32> to vector<8x128xf32>
    %19 = vector.broadcast %16 : vector<1x1xf32> to vector<8x128xf32>
    %20 = arith.mulf %19, %18 : vector<8x128xf32>
    %21 = arith.addf %15, %20 : vector<8x128xf32>
    %22 = vector.extract_strided_slice %9 {offsets = [0, 2], sizes = [1, 1], strides = [1, 1]} : vector<2x4xf32> to vector<1x1xf32>
    %23 = vector.extract_strided_slice %10 {offsets = [2, 0, 0], sizes = [1, 8, 128], strides = [1, 1, 1]} : vector<4x8x128xf32> to vector<1x8x128xf32>
    %24 = vector.shape_cast %23 : vector<1x8x128xf32> to vector<8x128xf32>
    %25 = vector.broadcast %22 : vector<1x1xf32> to vector<8x128xf32>
    %26 = arith.mulf %25, %24 : vector<8x128xf32>
    %27 = arith.addf %21, %26 : vector<8x128xf32>
    %28 = vector.extract_strided_slice %9 {offsets = [0, 3], sizes = [1, 1], strides = [1, 1]} : vector<2x4xf32> to vector<1x1xf32>
    %29 = vector.extract_strided_slice %10 {offsets = [3, 0, 0], sizes = [1, 8, 128], strides = [1, 1, 1]} : vector<4x8x128xf32> to vector<1x8x128xf32>
    %30 = vector.shape_cast %29 : vector<1x8x128xf32> to vector<8x128xf32>
    %31 = vector.broadcast %28 : vector<1x1xf32> to vector<8x128xf32>
    %32 = arith.mulf %31, %30 : vector<8x128xf32>
    %33 = arith.addf %27, %32 : vector<8x128xf32>
    %c0_5 = arith.constant 0 : index
    %c0_6 = arith.constant 0 : index
    %c0_7 = arith.constant 0 : index
    %34 = vector.load %arg3[%c0_5, %c0_6, %c0_7] : memref<2x8x128xf32, #tpu.memory_space<vmem>>, vector<1x8x128xf32>
    %35 = vector.shape_cast %34 : vector<1x8x128xf32> to vector<8x128xf32>
    %36 = vector.shape_cast %33 : vector<8x128xf32> to vector<1x8x128xf32>
    tpu.vector_store %arg3[%c0_5, %c0_6, %c0_7], %36 {strides = array<i32>} : memref<2x8x128xf32, #tpu.memory_space<vmem>>, vector<1x8x128xf32>,
    %37 = vector.extract_strided_slice %9 {offsets = [1, 0], sizes = [1, 1], strides = [1, 1]} : vector<2x4xf32> to vector<1x1xf32>
    %38 = vector.extract_strided_slice %10 {offsets = [0, 0, 0], sizes = [1, 8, 128], strides = [1, 1, 1]} : vector<4x8x128xf32> to vector<1x8x128xf32>
    %39 = vector.shape_cast %38 : vector<1x8x128xf32> to vector<8x128xf32>
    %40 = vector.broadcast %37 : vector<1x1xf32> to vector<8x128xf32>
    %41 = arith.mulf %40, %39 : vector<8x128xf32>
    %42 = vector.extract_strided_slice %9 {offsets = [1, 1], sizes = [1, 1], strides = [1, 1]} : vector<2x4xf32> to vector<1x1xf32>
    %43 = vector.extract_strided_slice %10 {offsets = [1, 0, 0], sizes = [1, 8, 128], strides = [1, 1, 1]} : vector<4x8x128xf32> to vector<1x8x128xf32>
    %44 = vector.shape_cast %43 : vector<1x8x128xf32> to vector<8x128xf32>
    %45 = vector.broadcast %42 : vector<1x1xf32> to vector<8x128xf32>
    %46 = arith.mulf %45, %44 : vector<8x128xf32>
    %47 = arith.addf %41, %46 : vector<8x128xf32>
    %48 = vector.extract_strided_slice %9 {offsets = [1, 2], sizes = [1, 1], strides = [1, 1]} : vector<2x4xf32> to vector<1x1xf32>
    %49 = vector.extract_strided_slice %10 {offsets = [2, 0, 0], sizes = [1, 8, 128], strides = [1, 1, 1]} : vector<4x8x128xf32> to vector<1x8x128xf32>
    %50 = vector.shape_cast %49 : vector<1x8x128xf32> to vector<8x128xf32>
    %51 = vector.broadcast %48 : vector<1x1xf32> to vector<8x128xf32>
    %52 = arith.mulf %51, %50 : vector<8x128xf32>
    %53 = arith.addf %47, %52 : vector<8x128xf32>
    %54 = vector.extract_strided_slice %9 {offsets = [1, 3], sizes = [1, 1], strides = [1, 1]} : vector<2x4xf32> to vector<1x1xf32>
    %55 = vector.extract_strided_slice %10 {offsets = [3, 0, 0], sizes = [1, 8, 128], strides = [1, 1, 1]} : vector<4x8x128xf32> to vector<1x8x128xf32>
    %56 = vector.shape_cast %55 : vector<1x8x128xf32> to vector<8x128xf32>
    %57 = vector.broadcast %54 : vector<1x1xf32> to vector<8x128xf32>
    %58 = arith.mulf %57, %56 : vector<8x128xf32>
    %59 = arith.addf %53, %58 : vector<8x128xf32>
    %c1 = arith.constant 1 : index
    %c0_8 = arith.constant 0 : index
    %c0_9 = arith.constant 0 : index
    %60 = vector.load %arg3[%c1, %c0_8, %c0_9] : memref<2x8x128xf32, #tpu.memory_space<vmem>>, vector<1x8x128xf32>
    %61 = vector.shape_cast %60 : vector<1x8x128xf32> to vector<8x128xf32>
    %62 = vector.shape_cast %59 : vector<8x128xf32> to vector<1x8x128xf32>
    tpu.vector_store %arg3[%c1, %c0_8, %c0_9], %62 {strides = array<i32>} : memref<2x8x128xf32, #tpu.memory_space<vmem>>, vector<1x8x128xf32>,
    return
  }
  func.func @transform_0(%arg0: i32) -> (i32, i32) {
    %c0_i32 = arith.constant 0 : i32
    %c0_i32_0 = arith.constant 0 : i32
    %c0_i32_1 = arith.constant 0 : i32
    return %c0_i32, %c0_i32_0 : i32, i32
  }
  func.func @transform_1(%arg0: i32) -> (i32, i32, i32) {
    %c0_i32 = arith.constant 0 : i32
    %c0_i32_0 = arith.constant 0 : i32
    %c0_i32_1 = arith.constant 0 : i32
    return %c0_i32, %arg0, %c0_i32_0 : i32, i32, i32
  }
  func.func @transform_2(%arg0: i32) -> (i32, i32, i32) {
    %c0_i32 = arith.constant 0 : i32
    %c0_i32_0 = arith.constant 0 : i32
    %c0_i32_1 = arith.constant 0 : i32
    return %c0_i32, %arg0, %c0_i32_0 : i32, i32, i32
  }
}

</mosaic_0001>

<bundles_post_ra>
// kernel: tpu_custom_call.1
= control target key start
LH: loop header
LB: loop body
LE: loop exit
PB: predicated region body
PF: predicated region fallthrough
CT: control target
= control target key end

     0   :  { %7 = vsyncpa [#allocation3], 0  ;;  %s300_s0 = inlined_call_operand.hbm [shape: f32[2,4], index: 0, kind: input, shape index: {}]   ;;  %s301_s1 = inlined_call_operand.hbm [shape: f32[4,8,128], index: 1, kind: input, shape index: {}]   ;;  %s302_s2 = inlined_call_operand.hbm [shape: f32[2,8,128], index: 2, kind: output, shape index: {}]  }
   0x1   :  { %8 = vsyncpa [#allocation6], 0 }
   0x2   :  { %9 = vsyncpa [#allocation4], 0  ;;  %s228_s9 = smov [#allocation2]   ;;  %s229_s11 = smov [#allocation5]  }
   0x3   :  { %s16_s10 = sshll.u32 %s228_s9, 4  ;;  %s25_s12 = sshll.u32 %s229_s11, 4  ;;  %s17_s10 = int_to_ptr.vmem [resolvable:$true] %s16_s10  ;;  %s251_s12 = int_to_ptr.vmem [resolvable:$true] %s25_s12 }
   0x4   :  { %s156_s15 = scalar_lea.hbm %s300_s0, 32 }
   0x5   :  { %p157_p0 = scmp.ne.s32.totalorder %s300_s0, %s156_s15  ;;  %p160_p1 = scmp.lt.u32.totalorder %s156_s15, %s300_s0 }
   0x7   :  { %p162_p2 = pnand %p160_p1, %p157_p0 }
   0x9   :  { %165 = shalt.err (!%p162_p2)
}
   0xa   :  { %s166_s20 = scalar_lea.vmem %s17_s10, 32  ;;  %p171_p4 = scmp.lt.s32.totalorder %s17_s10, %s17_s10 }
   0xb   :  { %p167_p3 = scmp.ne.s32.totalorder %s17_s10, %s166_s20  ;;  %p172_p5 = scmp.lt.s32.totalorder %s166_s20, %s166_s20 }
   0xd   :  { %p173_p6 = por %p172_p5, %p171_p4 }
   0xf   :  { %p174_p7 = pnand %p173_p6, %p167_p3 }
  0x11   :  { %177 = shalt.err (!%p174_p7)
}
  0x12   :  { %19 = dma.hbm_to_vmem [thread:$0]  %s300_s0, 32, %s17_s10, [#allocation3]  }
  0x13   :  { %s178_s25 = scalar_lea.hbm %s301_s1, 512 }
  0x14   :  { %p179_p8 = scmp.ne.s32.totalorder %s301_s1, %s178_s25  ;;  %p182_p9 = scmp.lt.u32.totalorder %s178_s25, %s301_s1 }
  0x16   :  { %p184_p10 = pnand %p182_p9, %p179_p8 }
  0x18   :  { %187 = shalt.err (!%p184_p10)
}
  0x19   :  { %s188_s30 = scalar_lea.vmem %s251_s12, 512  ;;  %p193_p12 = scmp.lt.s32.totalorder %s251_s12, %s251_s12 }
  0x1a   :  { %p189_p11 = scmp.ne.s32.totalorder %s251_s12, %s188_s30  ;;  %p194_p13 = scmp.lt.s32.totalorder %s188_s30, %s188_s30 }
  0x1c   :  { %p195_p0 = por %p194_p13, %p193_p12 }
  0x1e   :  { %p196_p1 = pnand %p195_p0, %p189_p11 }
  0x20   :  { %199 = shalt.err (!%p196_p1)
}
  0x21   :  { %s230_s0 = smov 128   ;;  %s231_s3 = smov 8  }
  0x22   :  { %31 = dma.hbm_to_vmem [thread:$0]  %s301_s1, 512, %s251_s12, [#allocation6], %s230_s0, %s230_s0, %s231_s3  }
  0x23   :  { %222 = dma.done.wait [#allocation3], 32  }
  0x24   :  { %223 = vsyncadd [#allocation3], 4294967264 }
  0x25   :  { %224 = dma.done.wait [#allocation6], 512  }
  0x26   :  { %225 = vsyncadd [#allocation6], 4294966784  ;;  %vm39_vm0 = vcmask 25600   ;;  %v38_v0 = vld [vmem:[#allocation2] sm:$0x3]  ;;  %s232_s1 = smov 125  }
  0x27   :  { %v40_v1 = vsel %vm39_vm0, %v38_v0, -inf  ;;  %s233_s6 = smov 127   ;;  %s234_s7 = smov 126   ;;  %v52_v17 = vld [vmem:[#allocation5 + $0x8] sm:$0xff]  ;;  %v51_v18 = vld [vmem:[#allocation5] sm:$0xff]  ;;  %v53_v22 = vld [vmem:[#allocation5 + $0x10] sm:$0xff] }
  0x28   :  { %41 = vmax.xlane.f32.xlu0 %v40_v1  ;;  %v54_v25 = vld [vmem:[#allocation5 + $0x18] sm:$0xff]  ;;  %s235_s16 = smov [#allocation7]  }
  0x29   :  { %s115_s17 = sshll.u32 %s235_s16, 4  ;;  %s116_s17 = int_to_ptr.vmem [resolvable:$true] %s115_s17 }
  0x2a   :  { %s200_s18 = scalar_lea.vmem %s116_s17, 256  ;;  %p205_p3 = scmp.lt.s32.totalorder %s116_s17, %s116_s17 }
  0x2b   :  { %p201_p2 = scmp.ne.s32.totalorder %s116_s17, %s200_s18  ;;  %p206_p4 = scmp.lt.s32.totalorder %s200_s18, %s200_s18 }
  0x2d   :  { %p207_p5 = por %p206_p4, %p205_p3 }
  0x2f   :  { %p208_p6 = pnand %p207_p5, %p201_p2 }
  0xb5   :  { %v42_v2 = vpop.xlane.xlu0 %41 }
  0xb6   :  { %v43_v3 = vsub.f32 %v38_v0, %v42_v2 }
  0xb8   :  { %v44_v4 = vmul.f32 1.442695, %v43_v3 }
  0xba   :  { %152 = vpow2.f32 %v44_v4 }
  0xc4   :  { %v153_v5 = vpop.eup %152 }
  0xc5   :  { %v46_v6 = vsel %vm39_vm0, %v153_v5, 0.0 }
  0xc6   :  { %47 = vadd.xlane.f32.xlu0 %v46_v6 }
 0x153   :  { %v48_v7 = vpop.xlane.xlu0 %47 }
 0x154   :  { %154 = vrcp.f32 %v48_v7 }
 0x15e   :  { %v155_v8 = vpop.eup %154 }
 0x15f   :  { %v50_v9 = vmul.f32 %v155_v8, %v153_v5 }
 0x161   :  { %74 = vrot.lane.b32.xlu0 %v50_v9, %s232_s1  ;;  %60 = vrot.lane.b32.xlu1 %v50_v9, %s233_s6  ;;  %128 = vpush %v50_v9  ;;  %v82_v10 = vrot.slane %v50_v9, 1 }
 0x165   :  { %67 = vrot.lane.b32.xlu1 %v50_v9, %s234_s7 }
 0x169   :  { %87 = vrot.lane.b32.xlu1 %v82_v10, %s233_s6 }
 0x16d   :  { %94 = vrot.lane.b32.xlu1 %v82_v10, %s234_s7 }
 0x171   :  { %101 = vrot.lane.b32.xlu1 %v82_v10, %s232_s1 }
 0x192   :  { %s129_s8 = spop %128 }
 0x193   :  { %v57_v19 = vstv %s129_s8 }
 0x194   :  { %v59_v23 = vmul.f32 %v57_v19, %v51_v18 }
 0x1d3   :  { %v61_v11 = vpop.permute.xlu1 %60  ;;  %v75_v13 = vpop.permute.xlu0 %74 }
 0x1d4   :  { %130 = vpush %v61_v11 }
 0x1d7   :  { %v68_v12 = vpop.permute.xlu1 %67 }
 0x1d8   :  { %132 = vpush %v68_v12 }
 0x1d9   :  { %134 = vpush %v75_v13 }
 0x1da   :  { %136 = vpush %v82_v10 }
 0x1db   :  { %v88_v14 = vpop.permute.xlu1 %87 }
 0x1dc   :  { %138 = vpush %v88_v14 }
 0x1df   :  { %v95_v15 = vpop.permute.xlu1 %94 }
 0x1e0   :  { %140 = vpush %v95_v15 }
 0x1e3   :  { %v102_v16 = vpop.permute.xlu1 %101 }
 0x1e4   :  { %142 = vpush %v102_v16 }
 0x205   :  { %s131_s9 = spop %130 }
 0x206   :  { %v63_v20 = vstv %s131_s9 }
 0x207   :  { %v65_v21 = vmul.f32 %v63_v20, %v52_v17 }
 0x209   :  { %s133_s10 = spop %132  ;;  %v66_v26 = vadd.f32 %v65_v21, %v59_v23 }
 0x20a   :  { %v70_v24 = vstv %s133_s10  ;;  %s135_s11 = spop %134 }
 0x20b   :  { %v72_v27 = vmul.f32 %v70_v24, %v53_v22  ;;  %v77_v28 = vstv %s135_s11  ;;  %s137_s12 = spop %136 }
 0x20c   :  { %v79_v30 = vmul.f32 %v77_v28, %v54_v25  ;;  %v84_v33 = vstv %s137_s12 }
 0x20d   :  { %v73_v29 = vadd.f32 %v72_v27, %v66_v26  ;;  %s139_s13 = spop %138  ;;  %v86_v36 = vmul.f32 %v84_v33, %v51_v18 }
 0x20e   :  { %v90_v31 = vstv %s139_s13 }
 0x20f   :  { %v80_v32 = vadd.f32 %v79_v30, %v73_v29  ;;  %v92_v34 = vmul.f32 %v90_v31, %v52_v17 }
 0x211   :  { %81 = vst [vmem:[#allocation7] sm:$0xff] %v80_v32  ;;  %s141_s14 = spop %140  ;;  %v93_v38 = vadd.f32 %v92_v34, %v86_v36 }
 0x212   :  { %v97_v35 = vstv %s141_s14 }
 0x213   :  { %v99_v37 = vmul.f32 %v97_v35, %v53_v22 }
 0x215   :  { %s143_s15 = spop %142  ;;  %v100_v40 = vadd.f32 %v99_v37, %v93_v38 }
 0x216   :  { %v104_v39 = vstv %s143_s15 }
 0x217   :  { %v106_v41 = vmul.f32 %v104_v39, %v54_v25 }
 0x219   :  { %v107_v42 = vadd.f32 %v106_v41, %v100_v40 }
 0x21b   :  { %109 = vst [vmem:[#allocation7 + $0x8] sm:$0xff] %v107_v42 }
 0x21c   :  { %211 = shalt.err (!%p208_p6)
}
 0x21d   :  { %s212_s21 = scalar_lea.hbm %s302_s2, 256 }
 0x21e   :  { %p213_p7 = scmp.ne.s32.totalorder %s302_s2, %s212_s21  ;;  %p216_p8 = scmp.lt.u32.totalorder %s212_s21, %s302_s2 }
 0x220   :  { %p218_p9 = pnand %p216_p8, %p213_p7 }
 0x222   :  { %221 = shalt.err (!%p218_p9)
}
 0x223   :  { %121 = dma.vmem_to_hbm [thread:$0]  %s116_s17, 256, %s302_s2, [#allocation4], %s230_s0, %s230_s0, %s231_s3  }
 0x224   :  { %226 = dma.done.wait [#allocation4], 256  }
 0x225   :  { %227 = vsyncadd [#allocation4], 4294967040 }
 0x226   :  { %125 = vsyncpa [#allocation3], 1 }
 0x227   :  { %126 = vsyncpa [#allocation6], 1 }
 0x228   :  { %127 = vsyncpa [#allocation4], 1 }

</bundles_post_ra>
